<compile_context>
chip_gen: v7x
topology: tpu7x:2x2x1
jax: 0.10.0
libtpu: 0.0.40
codegen_flags: <defaults>
</compile_context>

<pallas_src>
import math
import functools

import jax
import jax.numpy as jnp
from jax.experimental import pallas as pl
from jax.experimental.pallas import tpu as pltpu


# ----------------------------------------------------------------------------
# Pallas kernel: one grid step == one encoder layer applied to one batch tile
# ----------------------------------------------------------------------------
def encoder_stack_kernel(bias_ref, x_ref,
                         wqkv_ref, bqkv_ref, wo_ref,
                         w1_ref, b1_ref, w2_ref, vec_ref,
                         out_ref,
                         *, n_heads, head_dim, seq, hid):
    layer = pl.program_id(1)
    hd = head_dim

    # Initialise the carried activation from the kernel input on layer 0.
    # out_ref's block index is constant across the layer axis, so it stays
    # resident in VMEM and is flushed to HBM only when the batch tile changes.
    @pl.when(layer == 0)
    def _():
        out_ref[...] = x_ref[...]

    x = out_ref[...].reshape(seq, hid)                      # (S, H) f32 carry
    x_bf = x.astype(jnp.bfloat16)

    vec = vec_ref[...].reshape(6, hid)                      # packed per-layer vectors
    bo, g1, be1, b2, g2, be2 = (vec[i:i + 1] for i in range(6))

    # ---- head-batched fused Q/K/V projection ---------------------------------
    # Weight is head-major (nh, H, 3*hd): the projection directly yields a
    # heads-leading layout so the attention matmuls below are two batched
    # einsums over all heads (no per-head MXU calls, no masked lane stores).
    w_qkv = wqkv_ref[...].reshape(n_heads, hid, 3 * hd)     # bf16
    b_qkv = bqkv_ref[...].reshape(n_heads, 1, 3 * hd)       # f32
    x_b = jnp.broadcast_to(x_bf, (n_heads, seq, hid))
    qkv = jnp.einsum("hsi,hio->hso", x_b, w_qkv,
                     preferred_element_type=jnp.float32) + b_qkv   # (nh, S, 3hd)

    inv_scale = 1.0 / math.sqrt(hd)
    q = qkv[:, :, 0:hd] * inv_scale          # fold scale into Q (S*hd work, not S*S)
    k = qkv[:, :, hd:2 * hd]
    v = qkv[:, :, 2 * hd:3 * hd]

    # ---- multi-head attention: one batched einsum pair over all heads --------
    s = jnp.einsum("hqd,hkd->hqk",
                   q.astype(jnp.bfloat16), k.astype(jnp.bfloat16),
                   preferred_element_type=jnp.float32)       # (nh, S, S)
    s = s + bias_ref[...]                    # additive mask, broadcast once per layer
    s = s - jnp.max(s, axis=-1, keepdims=True)
    p = jnp.exp(s)
    # NOTE: a fully-padded sequence would make the denominator ~0; guard if
    # such inputs are possible.
    p = p * pl.reciprocal(jnp.sum(p, axis=-1, keepdims=True), approx=True)

    ctx = jnp.einsum("hqk,hkd->hqd",
                     p.astype(jnp.bfloat16), v.astype(jnp.bfloat16),
                     preferred_element_type=jnp.float32)     # (nh, S, hd)

    # heads back onto lanes with one concatenate (lane-aligned when hd%128==0),
    # then a single lane-dense (S,H)@(H,H) output projection.
    ctx2d = jnp.concatenate([ctx[h] for h in range(n_heads)], axis=-1)   # (S, H)
    attn = jnp.dot(ctx2d.astype(jnp.bfloat16), wo_ref[...].reshape(hid, hid),
                   preferred_element_type=jnp.float32) + bo

    # ---- LayerNorm with single-pass statistics --------------------------------
    def layer_norm(val, g, b):
        mu = jnp.mean(val, axis=-1, keepdims=True)
        msq = jnp.mean(val * val, axis=-1, keepdims=True)
        var = msq - mu * mu
        return (val - mu) * jax.lax.rsqrt(var + 1e-5) * g + b

    y = layer_norm(x + attn, g1, be1)

    # ---- position-wise feed-forward -------------------------------------------
    # TODO(synk): tile the pf contraction (inner grid axis / emit_pipeline) for
    # v7x's 64 MiB VMEM once H/pf reach production sizes.
    pf = w1_ref.shape[-1]
    h1 = jnp.dot(y.astype(jnp.bfloat16), w1_ref[...].reshape(hid, pf),
                 preferred_element_type=jnp.float32) + b1_ref[...].reshape(1, pf)
    h1 = jnp.maximum(h1, 0.0)
    ff = jnp.dot(h1.astype(jnp.bfloat16), w2_ref[...].reshape(pf, hid),
                 preferred_element_type=jnp.float32) + b2

    new_x = layer_norm(y + ff, g2, be2)

    out_ref[...] = new_x.reshape(1, seq, hid)                # carry / final output


def run_encoder_stack(x, mask_bias, sp, n_heads):
    """x: (B, S, H) f32 embedded activations; mask_bias: (B, 1, S) additive f32."""
    B, S, H = x.shape
    L = sp["wqkv"].shape[0]
    nh = n_heads
    hd = H // nh
    pf = sp["w1"].shape[2]

    def batch_spec(shape):                    # indexed by batch tile, constant in layer
        nd = len(shape)
        return pl.BlockSpec((1,) + tuple(shape),
                            lambda b, l, nd=nd: (b,) + (0,) * nd)

    def layer_spec(shape):                    # per-layer slice of a stacked tensor
        nd = len(shape)
        return pl.BlockSpec((1,) + tuple(shape),
                            lambda b, l, nd=nd: (l,) + (0,) * nd)

    in_specs = [
        batch_spec((1, S)),                   # additive padding-mask bias (B,1,S)
        batch_spec((S, H)),                   # input activation           (B,S,H)
        layer_spec((nh, H, 3 * hd)),          # head-major fused QKV weight (bf16)
        layer_spec((nh, 1, 3 * hd)),          # head-major fused QKV bias
        layer_spec((H, H)),                   # fc_o weight (bf16)
        layer_spec((H, pf)),                  # ffn fc_1 weight (bf16)
        layer_spec((1, pf)),                  # ffn fc_1 bias
        layer_spec((pf, H)),                  # ffn fc_2 weight (bf16)
        layer_spec((6, H)),                   # packed [bo, g1, be1, b2, g2, be2]
    ]

    kernel = functools.partial(encoder_stack_kernel, n_heads=nh, head_dim=hd,
                               seq=S, hid=H)

    # explicit scoped-VMEM budget: double-buffered per-layer weight blocks
    # plus activation / score intermediates, with margin.
    w_bytes = 2 * (nh * H * 3 * hd + H * H + 2 * H * pf) \
        + 4 * (nh * 3 * hd + 6 * H + pf)
    a_bytes = 4 * S * H * 4 + 2 * nh * S * H \
        + 4 * nh * S * (2 * S + 4 * hd) + 4 * S * pf
    vmem_limit = int(min(96 << 20, max(32 << 20,
                                       4 * w_bytes + 2 * a_bytes + (8 << 20))))

    return pl.pallas_call(
        kernel,
        out_shape=jax.ShapeDtypeStruct((B, S, H), jnp.float32),
        grid=(B, L),
        in_specs=in_specs,
        out_specs=pl.BlockSpec((1, S, H), lambda b, l: (b, 0, 0)),
        compiler_params=pltpu.CompilerParams(
            dimension_semantics=("parallel", "arbitrary"),
            vmem_limit_bytes=vmem_limit),
    )(mask_bias, x,
      sp["wqkv"], sp["bqkv"], sp["wo"],
      sp["w1"], sp["b1"], sp["w2"], sp["vec"])


# ----------------------------------------------------------------------------
# Glue: parameters, embeddings, positional encoding
# ----------------------------------------------------------------------------
def positional_encoding(max_len, hid_dim):
    position = jnp.arange(max_len, dtype=jnp.float32)[:, None]
    div_term = jnp.exp(jnp.arange(0, hid_dim, 2, dtype=jnp.float32)
                       * -(math.log(10000.0) / hid_dim))
    pe = jnp.zeros((max_len, hid_dim), jnp.float32)
    pe = pe.at[:, 0::2].set(jnp.sin(position * div_term))
    pe = pe.at[:, 1::2].set(jnp.cos(position * div_term))
    return pe


def init_linear(key, fan_in, fan_out):
    k1, k2 = jax.random.split(key)
    bound = 1.0 / math.sqrt(fan_in)
    w = jax.random.uniform(k1, (fan_in, fan_out), jnp.float32, -bound, bound)
    b = jax.random.uniform(k2, (1, fan_out), jnp.float32, -bound, bound)
    return w, b


def init_encoder_params(key, input_dim, hid_dim, n_layers, pf_dim):
    keys = jax.random.split(key, 1 + n_layers)
    tok_emb = jax.random.normal(keys[0], (input_dim, hid_dim), jnp.float32)
    layers = []
    for li in range(n_layers):
        lk = jax.random.split(keys[1 + li], 6)
        wq, bq = init_linear(lk[0], hid_dim, hid_dim)
        wk, bk = init_linear(lk[1], hid_dim, hid_dim)
        wv, bv = init_linear(lk[2], hid_dim, hid_dim)
        wo, bo = init_linear(lk[3], hid_dim, hid_dim)
        w1, b1 = init_linear(lk[4], hid_dim, pf_dim)
        w2, b2 = init_linear(lk[5], pf_dim, hid_dim)
        layers.append(dict(
            wq=wq, bq=bq, wk=wk, bk=bk, wv=wv, bv=bv, wo=wo, bo=bo,
            g1=jnp.ones((1, hid_dim), jnp.float32),
            be1=jnp.zeros((1, hid_dim), jnp.float32),
            w1=w1, b1=b1, w2=w2, b2=b2,
            g2=jnp.ones((1, hid_dim), jnp.float32),
            be2=jnp.zeros((1, hid_dim), jnp.float32),
        ))
    return tok_emb, layers


def stack_layer_params(layers, n_heads):
    """Stack per-layer params on a leading axis; MXU weights in bf16.

    Q/K/V weights & biases are re-laid out head-major so the kernel's
    projection directly produces a heads-leading tensor.
    """
    H = layers[0]["wq"].shape[0]
    hd = H // n_heads
    wqkv, bqkv, wo, w1, b1, w2, vec = [], [], [], [], [], [], []
    for p in layers:
        wq = p["wq"].reshape(H, n_heads, hd)
        wk = p["wk"].reshape(H, n_heads, hd)
        wv = p["wv"].reshape(H, n_heads, hd)
        w = jnp.concatenate([wq, wk, wv], axis=-1)            # (H, nh, 3hd)
        wqkv.append(jnp.transpose(w, (1, 0, 2)))              # (nh, H, 3hd)
        bq = p["bq"].reshape(n_heads, 1, hd)
        bk = p["bk"].reshape(n_heads, 1, hd)
        bv = p["bv"].reshape(n_heads, 1, hd)
        bqkv.append(jnp.concatenate([bq, bk, bv], axis=-1))   # (nh, 1, 3hd)
        wo.append(p["wo"]); w1.append(p["w1"]); b1.append(p["b1"]); w2.append(p["w2"])
        vec.append(jnp.concatenate([p["bo"], p["g1"], p["be1"],
                                    p["b2"], p["g2"], p["be2"]], axis=0))  # (6, H)
    st = lambda xs: jnp.stack(xs, axis=0)
    return dict(
        wqkv=st(wqkv).astype(jnp.bfloat16), bqkv=st(bqkv),
        wo=st(wo).astype(jnp.bfloat16),
        w1=st(w1).astype(jnp.bfloat16), b1=st(b1),
        w2=st(w2).astype(jnp.bfloat16),
        vec=st(vec),
    )


def encoder_forward(src, src_mask, tok_emb, stacked_params, n_heads, pe):
    B, S = src.shape
    H = tok_emb.shape[1]
    # TODO(synk): token-embedding gather + positional encoding stay in plain JAX
    # (no blocked Pallas equivalent worth writing at these sizes); dropout = identity.
    x = tok_emb[src] * jnp.sqrt(jnp.float32(H)) + pe[None, :S, :]
    mask_bias = jnp.where(src_mask == 0, jnp.float32(-1e10), jnp.float32(0.0))
    return run_encoder_stack(x.astype(jnp.float32), mask_bias.astype(jnp.float32),
                             stacked_params, n_heads)


# ----------------------------------------------------------------------------
# Pure-JAX reference (mirrors the kernel's bf16 MXU-input precision; otherwise
# exactly the torch Encoder forward with dropout = identity).
# ----------------------------------------------------------------------------
def encoder_reference(src, src_mask, tok_emb, layer_params, n_heads, pe):
    B, S = src.shape
    H = tok_emb.shape[1]
    hd = H // n_heads
    x = (tok_emb[src] * jnp.sqrt(jnp.float32(H)) + pe[None, :S, :]).reshape(B * S, H)
    bias = jnp.where(src_mask == 0, jnp.float32(-1e10), jnp.float32(0.0))  # (B,1,S)

    def bf(a):
        return a.astype(jnp.bfloat16)

    def mm(a, w):
        return jnp.dot(bf(a), bf(w), preferred_element_type=jnp.float32)

    def ln(v, g, b):
        mu = jnp.mean(v, axis=-1, keepdims=True)
        var = jnp.mean((v - mu) ** 2, axis=-1, keepdims=True)
        return (v - mu) * jax.lax.rsqrt(var + 1e-5) * g + b

    inv_scale = 1.0 / math.sqrt(hd)
    for p in layer_params:
        q = (mm(x, p["wq"]) + p["bq"]).reshape(B, S, n_heads, hd).transpose(0, 2, 1, 3)
        k = (mm(x, p["wk"]) + p["bk"]).reshape(B, S, n_heads, hd).transpose(0, 2, 1, 3)
        v = (mm(x, p["wv"]) + p["bv"]).reshape(B, S, n_heads, hd).transpose(0, 2, 1, 3)
        e = jnp.einsum("bhqd,bhkd->bhqk", bf(q), bf(k),
                       preferred_element_type=jnp.float32) * inv_scale
        e = e + bias[:, :, None, :]
        a = jax.nn.softmax(e, axis=-1)
        ctx = jnp.einsum("bhqk,bhkd->bhqd", bf(a), bf(v),
                         preferred_element_type=jnp.float32)
        ctx = ctx.transpose(0, 2, 1, 3).reshape(B * S, H)
        attn = mm(ctx, p["wo"]) + p["bo"]
        y = ln(x + attn, p["g1"], p["be1"])
        h1 = jnp.maximum(mm(y, p["w1"]) + p["b1"], 0.0)
        ff = mm(h1, p["w2"]) + p["b2"]
        x = ln(y + ff, p["g2"], p["be2"])
    return x.reshape(B, S, H)


if __name__ == "__main__":
    key = jax.random.PRNGKey(0)
    B, S = 2, 8
    input_dim, hid_dim, n_layers, n_heads, pf_dim, max_length = 50, 32, 2, 4, 64, 16

    k_src, k_params = jax.random.split(key)
    src = jax.random.randint(k_src, (B, S), 0, input_dim, dtype=jnp.int32)

    # mask: [B, 1, S], 1 = valid token, 0 = padding
    src_mask = jnp.ones((B, 1, S), dtype=jnp.int32)
    src_mask = src_mask.at[1, 0, 6:].set(0)

    tok_emb, layer_params = init_encoder_params(k_params, input_dim, hid_dim,
                                                n_layers, pf_dim)
    stacked = stack_layer_params(layer_params, n_heads)
    pe = positional_encoding(max_length, hid_dim)

    out = encoder_forward(src, src_mask, tok_emb, stacked, n_heads, pe)
    out = jax.block_until_ready(out)

    ref = encoder_reference(src, src_mask, tok_emb, layer_params, n_heads, pe)
    assert out.shape == (B, S, hid_dim)
    # tolerance covers the approximate EUP reciprocal and MXU accumulation-order
    # differences (both sides use bf16 matmul inputs with f32 accumulation)
    assert jnp.allclose(out, ref, atol=2e-2, rtol=2e-2)

    print("KERNEL_OK")
</pallas_src>

<mosaic_0001>
module attributes {stable_mosaic.version = 11 : i64} {
  func.func @encoder_stack_kernel(%arg0: i32, %arg1: i32, %arg2: memref<1x1x8xf32, #tpu.memory_space<vmem>>, %arg3: memref<1x8x32xf32, #tpu.memory_space<vmem>>, %arg4: memref<1x4x32x24xbf16, #tpu.memory_space<vmem>>, %arg5: memref<1x4x1x24xf32, #tpu.memory_space<vmem>>, %arg6: memref<1x32x32xbf16, #tpu.memory_space<vmem>>, %arg7: memref<1x32x64xbf16, #tpu.memory_space<vmem>>, %arg8: memref<1x1x64xf32, #tpu.memory_space<vmem>>, %arg9: memref<1x64x32xbf16, #tpu.memory_space<vmem>>, %arg10: memref<1x6x32xf32, #tpu.memory_space<vmem>>, %arg11: memref<1x8x32xf32, #tpu.memory_space<vmem>>) attributes {dimension_semantics = [#tpu.dimension_semantics<parallel>, #tpu.dimension_semantics<arbitrary>], iteration_bounds = array<i64: 2, 2>, scalar_prefetch = 0 : i64, scratch_operands = 0 : i64, tpu.core_type = #tpu.core_type<tc>, window_params = [{transform_indices = @transform_0, window_bounds = array<i64: 1, 1, 8>}, {transform_indices = @transform_1, window_bounds = array<i64: 1, 8, 32>}, {transform_indices = @transform_2, window_bounds = array<i64: 1, 4, 32, 24>}, {transform_indices = @transform_3, window_bounds = array<i64: 1, 4, 1, 24>}, {transform_indices = @transform_4, window_bounds = array<i64: 1, 32, 32>}, {transform_indices = @transform_5, window_bounds = array<i64: 1, 32, 64>}, {transform_indices = @transform_6, window_bounds = array<i64: 1, 1, 64>}, {transform_indices = @transform_7, window_bounds = array<i64: 1, 64, 32>}, {transform_indices = @transform_8, window_bounds = array<i64: 1, 6, 32>}, {transform_indices = @transform_9, window_bounds = array<i64: 1, 8, 32>}]} {
    %c0_i32 = arith.constant 0 : i32
    %0 = arith.cmpi eq, %arg1, %c0_i32 : i32
    %1 = arith.extui %0 : i1 to i32
    %c0_i32_0 = arith.constant 0 : i32
    %2 = arith.cmpi ne, %1, %c0_i32_0 : i32
    scf.if %2 {
      %c0_51 = arith.constant 0 : index
      %c0_52 = arith.constant 0 : index
      %c0_53 = arith.constant 0 : index
      %126 = vector.load %arg3[%c0_51, %c0_52, %c0_53] : memref<1x8x32xf32, #tpu.memory_space<vmem>>, vector<1x8x32xf32>
      %c0_54 = arith.constant 0 : index
      %c0_55 = arith.constant 0 : index
      %c0_56 = arith.constant 0 : index
      %127 = vector.load %arg11[%c0_54, %c0_55, %c0_56] : memref<1x8x32xf32, #tpu.memory_space<vmem>>, vector<1x8x32xf32>
      tpu.vector_store %arg11[%c0_54, %c0_55, %c0_56], %126 {strides = array<i32>} : memref<1x8x32xf32, #tpu.memory_space<vmem>>, vector<1x8x32xf32>,
    } else {
    }
    %c0 = arith.constant 0 : index
    %c0_1 = arith.constant 0 : index
    %c0_2 = arith.constant 0 : index
    %3 = vector.load %arg11[%c0, %c0_1, %c0_2] : memref<1x8x32xf32, #tpu.memory_space<vmem>>, vector<1x8x32xf32>
    %4 = vector.shape_cast %3 : vector<1x8x32xf32> to vector<8x32xf32>
    %5 = arith.truncf %4 : vector<8x32xf32> to vector<8x32xbf16>
    %c0_3 = arith.constant 0 : index
    %c0_4 = arith.constant 0 : index
    %c0_5 = arith.constant 0 : index
    %6 = vector.load %arg10[%c0_3, %c0_4, %c0_5] : memref<1x6x32xf32, #tpu.memory_space<vmem>>, vector<1x6x32xf32>
    %7 = vector.shape_cast %6 : vector<1x6x32xf32> to vector<6x32xf32>
    %8 = vector.extract_strided_slice %7 {offsets = [0, 0], sizes = [1, 32], strides = [1, 1]} : vector<6x32xf32> to vector<1x32xf32>
    %9 = vector.extract_strided_slice %7 {offsets = [1, 0], sizes = [1, 32], strides = [1, 1]} : vector<6x32xf32> to vector<1x32xf32>
    %10 = vector.extract_strided_slice %7 {offsets = [2, 0], sizes = [1, 32], strides = [1, 1]} : vector<6x32xf32> to vector<1x32xf32>
    %11 = vector.extract_strided_slice %7 {offsets = [3, 0], sizes = [1, 32], strides = [1, 1]} : vector<6x32xf32> to vector<1x32xf32>
    %12 = vector.extract_strided_slice %7 {offsets = [4, 0], sizes = [1, 32], strides = [1, 1]} : vector<6x32xf32> to vector<1x32xf32>
    %13 = vector.extract_strided_slice %7 {offsets = [5, 0], sizes = [1, 32], strides = [1, 1]} : vector<6x32xf32> to vector<1x32xf32>
    %c0_6 = arith.constant 0 : index
    %c0_7 = arith.constant 0 : index
    %c0_8 = arith.constant 0 : index
    %c0_9 = arith.constant 0 : index
    %14 = vector.load %arg4[%c0_6, %c0_7, %c0_8, %c0_9] : memref<1x4x32x24xbf16, #tpu.memory_space<vmem>>, vector<1x4x32x24xbf16>
    %15 = vector.shape_cast %14 : vector<1x4x32x24xbf16> to vector<4x32x24xbf16>
    %c0_10 = arith.constant 0 : index
    %c0_11 = arith.constant 0 : index
    %c0_12 = arith.constant 0 : index
    %c0_13 = arith.constant 0 : index
    %16 = vector.load %arg5[%c0_10, %c0_11, %c0_12, %c0_13] : memref<1x4x1x24xf32, #tpu.memory_space<vmem>>, vector<1x4x1x24xf32>
    %17 = vector.shape_cast %16 : vector<1x4x1x24xf32> to vector<4x1x24xf32>
    %18 = vector.shape_cast %5 : vector<8x32xbf16> to vector<1x8x32xbf16>
    %19 = vector.broadcast %18 : vector<1x8x32xbf16> to vector<4x8x32xbf16>
    "tpu.trace_start"() <{level = 10 : i32, message = "hsi,hio->hso"}> : () -> ()
    %cst = arith.constant dense<0.000000e+00> : vector<4x8x24xf32>
    %20 = tpu.matmul %19, %15, %cst {dimension_numbers = #tpu.dot_dimension_numbers<[2], [1], [1], [2], [0, 0, 0, 1, 1, 2], [0], [0]>} : vector<4x8x32xbf16>, vector<4x32x24xbf16>, vector<4x8x24xf32> -> vector<4x8x24xf32>
    "tpu.trace_stop"() : () -> ()
    %21 = vector.broadcast %17 : vector<4x1x24xf32> to vector<4x8x24xf32>
    %22 = arith.addf %20, %21 : vector<4x8x24xf32>
    %23 = vector.extract_strided_slice %22 {offsets = [0, 0, 0], sizes = [4, 8, 8], strides = [1, 1, 1]} : vector<4x8x24xf32> to vector<4x8x8xf32>
    %cst_14 = arith.constant 0.353553385 : f32
    %24 = vector.broadcast %cst_14 : f32 to vector<4x8x8xf32>
    %25 = arith.mulf %23, %24 : vector<4x8x8xf32>
    %26 = vector.extract_strided_slice %22 {offsets = [0, 0, 8], sizes = [4, 8, 8], strides = [1, 1, 1]} : vector<4x8x24xf32> to vector<4x8x8xf32>
    %27 = vector.extract_strided_slice %22 {offsets = [0, 0, 16], sizes = [4, 8, 8], strides = [1, 1, 1]} : vector<4x8x24xf32> to vector<4x8x8xf32>
    %28 = arith.truncf %25 : vector<4x8x8xf32> to vector<4x8x8xbf16>
    %29 = arith.truncf %26 : vector<4x8x8xf32> to vector<4x8x8xbf16>
    "tpu.trace_start"() <{level = 10 : i32, message = "hqd,hkd->hqk"}> : () -> ()
    %cst_15 = arith.constant dense<0.000000e+00> : vector<4x8x8xf32>
    %30 = tpu.matmul %28, %29, %cst_15 {dimension_numbers = #tpu.dot_dimension_numbers<[2], [2], [1], [1], [0, 0, 0, 1, 1, 1], [0], [0]>} : vector<4x8x8xbf16>, vector<4x8x8xbf16>, vector<4x8x8xf32> -> vector<4x8x8xf32>
    "tpu.trace_stop"() : () -> ()
    %c0_16 = arith.constant 0 : index
    %c0_17 = arith.constant 0 : index
    %c0_18 = arith.constant 0 : index
    %31 = vector.load %arg2[%c0_16, %c0_17, %c0_18] : memref<1x1x8xf32, #tpu.memory_space<vmem>>, vector<1x1x8xf32>
    %32 = vector.broadcast %31 : vector<1x1x8xf32> to vector<4x8x8xf32>
    %33 = arith.addf %30, %32 : vector<4x8x8xf32>
    %cst_19 = arith.constant dense<0xFF800000> : vector<4x8xf32>
    %34 = vector.multi_reduction <maximumf>, %33, %cst_19 [2] : vector<4x8x8xf32> to vector<4x8xf32>
    %35 = vector.shape_cast %34 : vector<4x8xf32> to vector<4x8x1xf32>
    %36 = vector.broadcast %35 : vector<4x8x1xf32> to vector<4x8x8xf32>
    %37 = arith.subf %33, %36 : vector<4x8x8xf32>
    %38 = math.exp %37 : vector<4x8x8xf32>
    %cst_20 = arith.constant dense<0.000000e+00> : vector<4x8xf32>
    %39 = vector.multi_reduction <add>, %38, %cst_20 [2] : vector<4x8x8xf32> to vector<4x8xf32>
    %40 = vector.shape_cast %39 : vector<4x8xf32> to vector<4x8x1xf32>
    %41 = tpu.reciprocal %40 {approx = true} : vector<4x8x1xf32> -> vector<4x8x1xf32>
    %42 = vector.broadcast %41 : vector<4x8x1xf32> to vector<4x8x8xf32>
    %43 = arith.mulf %38, %42 : vector<4x8x8xf32>
    %44 = arith.truncf %43 : vector<4x8x8xf32> to vector<4x8x8xbf16>
    %45 = arith.truncf %27 : vector<4x8x8xf32> to vector<4x8x8xbf16>
    "tpu.trace_start"() <{level = 10 : i32, message = "hqk,hkd->hqd"}> : () -> ()
    %cst_21 = arith.constant dense<0.000000e+00> : vector<4x8x8xf32>
    %46 = tpu.matmul %44, %45, %cst_21 {dimension_numbers = #tpu.dot_dimension_numbers<[2], [1], [1], [2], [0, 0, 0, 1, 1, 2], [0], [0]>} : vector<4x8x8xbf16>, vector<4x8x8xbf16>, vector<4x8x8xf32> -> vector<4x8x8xf32>
    "tpu.trace_stop"() : () -> ()
    %47 = vector.extract_strided_slice %46 {offsets = [0, 0, 0], sizes = [1, 8, 8], strides = [1, 1, 1]} : vector<4x8x8xf32> to vector<1x8x8xf32>
    %48 = vector.shape_cast %47 : vector<1x8x8xf32> to vector<8x8xf32>
    %49 = vector.extract_strided_slice %46 {offsets = [1, 0, 0], sizes = [1, 8, 8], strides = [1, 1, 1]} : vector<4x8x8xf32> to vector<1x8x8xf32>
    %50 = vector.shape_cast %49 : vector<1x8x8xf32> to vector<8x8xf32>
    %51 = vector.extract_strided_slice %46 {offsets = [2, 0, 0], sizes = [1, 8, 8], strides = [1, 1, 1]} : vector<4x8x8xf32> to vector<1x8x8xf32>
    %52 = vector.shape_cast %51 : vector<1x8x8xf32> to vector<8x8xf32>
    %53 = vector.extract_strided_slice %46 {offsets = [3, 0, 0], sizes = [1, 8, 8], strides = [1, 1, 1]} : vector<4x8x8xf32> to vector<1x8x8xf32>
    %54 = vector.shape_cast %53 : vector<1x8x8xf32> to vector<8x8xf32>
    %55 = tpu.concatenate %48, %50, %52, %54 in 1 : vector<8x8xf32>, vector<8x8xf32>, vector<8x8xf32>, vector<8x8xf32> -> vector<8x32xf32>
    %56 = arith.truncf %55 : vector<8x32xf32> to vector<8x32xbf16>
    %c0_22 = arith.constant 0 : index
    %c0_23 = arith.constant 0 : index
    %c0_24 = arith.constant 0 : index
    %57 = vector.load %arg6[%c0_22, %c0_23, %c0_24] : memref<1x32x32xbf16, #tpu.memory_space<vmem>>, vector<1x32x32xbf16>
    %58 = vector.shape_cast %57 : vector<1x32x32xbf16> to vector<32x32xbf16>
    %cst_25 = arith.constant dense<0.000000e+00> : vector<8x32xf32>
    %59 = tpu.matmul %56, %58, %cst_25 {dimension_numbers = #tpu.dot_dimension_numbers<[1], [0], [0], [1], [0, 0, 1, 1], [], []>} : vector<8x32xbf16>, vector<32x32xbf16>, vector<8x32xf32> -> vector<8x32xf32>
    %60 = vector.broadcast %8 : vector<1x32xf32> to vector<8x32xf32>
    %61 = arith.addf %59, %60 : vector<8x32xf32>
    %62 = arith.addf %4, %61 : vector<8x32xf32>
    %cst_26 = arith.constant dense<0.000000e+00> : vector<8xf32>
    %63 = vector.multi_reduction <add>, %62, %cst_26 [1] : vector<8x32xf32> to vector<8xf32>
    %64 = vector.shape_cast %63 : vector<8xf32> to vector<8x1xf32>
    %cst_27 = arith.constant 3.200000e+01 : f32
    %65 = vector.broadcast %cst_27 : f32 to vector<8x1xf32>
    %66 = arith.divf %64, %65 : vector<8x1xf32>
    %67 = arith.mulf %62, %62 : vector<8x32xf32>
    %cst_28 = arith.constant dense<0.000000e+00> : vector<8xf32>
    %68 = vector.multi_reduction <add>, %67, %cst_28 [1] : vector<8x32xf32> to vector<8xf32>
    %69 = vector.shape_cast %68 : vector<8xf32> to vector<8x1xf32>
    %cst_29 = arith.constant 3.200000e+01 : f32
    %70 = vector.broadcast %cst_29 : f32 to vector<8x1xf32>
    %71 = arith.divf %69, %70 : vector<8x1xf32>
    %72 = arith.mulf %66, %66 : vector<8x1xf32>
    %73 = arith.subf %71, %72 : vector<8x1xf32>
    %74 = vector.broadcast %66 : vector<8x1xf32> to vector<8x32xf32>
    %75 = arith.subf %62, %74 : vector<8x32xf32>
    %cst_30 = arith.constant 9.99999974E-6 : f32
    %76 = vector.broadcast %cst_30 : f32 to vector<8x1xf32>
    %77 = arith.addf %73, %76 : vector<8x1xf32>
    %78 = math.rsqrt %77 : vector<8x1xf32>
    %79 = vector.broadcast %78 : vector<8x1xf32> to vector<8x32xf32>
    %80 = arith.mulf %75, %79 : vector<8x32xf32>
    %81 = vector.broadcast %9 : vector<1x32xf32> to vector<8x32xf32>
    %82 = arith.mulf %80, %81 : vector<8x32xf32>
    %83 = vector.broadcast %10 : vector<1x32xf32> to vector<8x32xf32>
    %84 = arith.addf %82, %83 : vector<8x32xf32>
    %85 = arith.truncf %84 : vector<8x32xf32> to vector<8x32xbf16>
    %c0_31 = arith.constant 0 : index
    %c0_32 = arith.constant 0 : index
    %c0_33 = arith.constant 0 : index
    %86 = vector.load %arg7[%c0_31, %c0_32, %c0_33] : memref<1x32x64xbf16, #tpu.memory_space<vmem>>, vector<1x32x64xbf16>
    %87 = vector.shape_cast %86 : vector<1x32x64xbf16> to vector<32x64xbf16>
    %cst_34 = arith.constant dense<0.000000e+00> : vector<8x64xf32>
    %88 = tpu.matmul %85, %87, %cst_34 {dimension_numbers = #tpu.dot_dimension_numbers<[1], [0], [0], [1], [0, 0, 1, 1], [], []>} : vector<8x32xbf16>, vector<32x64xbf16>, vector<8x64xf32> -> vector<8x64xf32>
    %c0_35 = arith.constant 0 : index
    %c0_36 = arith.constant 0 : index
    %c0_37 = arith.constant 0 : index
    %89 = vector.load %arg8[%c0_35, %c0_36, %c0_37] : memref<1x1x64xf32, #tpu.memory_space<vmem>>, vector<1x1x64xf32>
    %90 = vector.shape_cast %89 : vector<1x1x64xf32> to vector<1x64xf32>
    %91 = vector.broadcast %90 : vector<1x64xf32> to vector<8x64xf32>
    %92 = arith.addf %88, %91 : vector<8x64xf32>
    %cst_38 = arith.constant 0.000000e+00 : f32
    %93 = vector.broadcast %cst_38 : f32 to vector<8x64xf32>
    %94 = arith.maximumf %92, %93 : vector<8x64xf32>
    %95 = arith.truncf %94 : vector<8x64xf32> to vector<8x64xbf16>
    %c0_39 = arith.constant 0 : index
    %c0_40 = arith.constant 0 : index
    %c0_41 = arith.constant 0 : index
    %96 = vector.load %arg9[%c0_39, %c0_40, %c0_41] : memref<1x64x32xbf16, #tpu.memory_space<vmem>>, vector<1x64x32xbf16>
    %97 = vector.shape_cast %96 : vector<1x64x32xbf16> to vector<64x32xbf16>
    %cst_42 = arith.constant dense<0.000000e+00> : vector<8x32xf32>
    %98 = tpu.matmul %95, %97, %cst_42 {dimension_numbers = #tpu.dot_dimension_numbers<[1], [0], [0], [1], [0, 0, 1, 1], [], []>} : vector<8x64xbf16>, vector<64x32xbf16>, vector<8x32xf32> -> vector<8x32xf32>
    %99 = vector.broadcast %11 : vector<1x32xf32> to vector<8x32xf32>
    %100 = arith.addf %98, %99 : vector<8x32xf32>
    %101 = arith.addf %84, %100 : vector<8x32xf32>
    %cst_43 = arith.constant dense<0.000000e+00> : vector<8xf32>
    %102 = vector.multi_reduction <add>, %101, %cst_43 [1] : vector<8x32xf32> to vector<8xf32>
    %103 = vector.shape_cast %102 : vector<8xf32> to vector<8x1xf32>
    %cst_44 = arith.constant 3.200000e+01 : f32
    %104 = vector.broadcast %cst_44 : f32 to vector<8x1xf32>
    %105 = arith.divf %103, %104 : vector<8x1xf32>
    %106 = arith.mulf %101, %101 : vector<8x32xf32>
    %cst_45 = arith.constant dense<0.000000e+00> : vector<8xf32>
    %107 = vector.multi_reduction <add>, %106, %cst_45 [1] : vector<8x32xf32> to vector<8xf32>
    %108 = vector.shape_cast %107 : vector<8xf32> to vector<8x1xf32>
    %cst_46 = arith.constant 3.200000e+01 : f32
    %109 = vector.broadcast %cst_46 : f32 to vector<8x1xf32>
    %110 = arith.divf %108, %109 : vector<8x1xf32>
    %111 = arith.mulf %105, %105 : vector<8x1xf32>
    %112 = arith.subf %110, %111 : vector<8x1xf32>
    %113 = vector.broadcast %105 : vector<8x1xf32> to vector<8x32xf32>
    %114 = arith.subf %101, %113 : vector<8x32xf32>
    %cst_47 = arith.constant 9.99999974E-6 : f32
    %115 = vector.broadcast %cst_47 : f32 to vector<8x1xf32>
    %116 = arith.addf %112, %115 : vector<8x1xf32>
    %117 = math.rsqrt %116 : vector<8x1xf32>
    %118 = vector.broadcast %117 : vector<8x1xf32> to vector<8x32xf32>
    %119 = arith.mulf %114, %118 : vector<8x32xf32>
    %120 = vector.broadcast %12 : vector<1x32xf32> to vector<8x32xf32>
    %121 = arith.mulf %119, %120 : vector<8x32xf32>
    %122 = vector.broadcast %13 : vector<1x32xf32> to vector<8x32xf32>
    %123 = arith.addf %121, %122 : vector<8x32xf32>
    %124 = vector.shape_cast %123 : vector<8x32xf32> to vector<1x8x32xf32>
    %c0_48 = arith.constant 0 : index
    %c0_49 = arith.constant 0 : index
    %c0_50 = arith.constant 0 : index
    %125 = vector.load %arg11[%c0_48, %c0_49, %c0_50] : memref<1x8x32xf32, #tpu.memory_space<vmem>>, vector<1x8x32xf32>
    tpu.vector_store %arg11[%c0_48, %c0_49, %c0_50], %124 {strides = array<i32>} : memref<1x8x32xf32, #tpu.memory_space<vmem>>, vector<1x8x32xf32>,
    return
  }
  func.func @transform_0(%arg0: i32, %arg1: i32) -> (i32, i32, i32) {
    %c0_i32 = arith.constant 0 : i32
    %c0_i32_0 = arith.constant 0 : i32
    %c0_i32_1 = arith.constant 0 : i32
    return %arg0, %c0_i32, %c0_i32_0 : i32, i32, i32
  }
  func.func @transform_1(%arg0: i32, %arg1: i32) -> (i32, i32, i32) {
    %c0_i32 = arith.constant 0 : i32
    %c0_i32_0 = arith.constant 0 : i32
    %c0_i32_1 = arith.constant 0 : i32
    return %arg0, %c0_i32, %c0_i32_0 : i32, i32, i32
  }
  func.func @transform_2(%arg0: i32, %arg1: i32) -> (i32, i32, i32, i32) {
    %c0_i32 = arith.constant 0 : i32
    %c0_i32_0 = arith.constant 0 : i32
    %c0_i32_1 = arith.constant 0 : i32
    %c0_i32_2 = arith.constant 0 : i32
    return %arg1, %c0_i32, %c0_i32_0, %c0_i32_1 : i32, i32, i32, i32
  }
  func.func @transform_3(%arg0: i32, %arg1: i32) -> (i32, i32, i32, i32) {
    %c0_i32 = arith.constant 0 : i32
    %c0_i32_0 = arith.constant 0 : i32
    %c0_i32_1 = arith.constant 0 : i32
    %c0_i32_2 = arith.constant 0 : i32
    return %arg1, %c0_i32, %c0_i32_0, %c0_i32_1 : i32, i32, i32, i32
  }
  func.func @transform_4(%arg0: i32, %arg1: i32) -> (i32, i32, i32) {
    %c0_i32 = arith.constant 0 : i32
    %c0_i32_0 = arith.constant 0 : i32
    %c0_i32_1 = arith.constant 0 : i32
    return %arg1, %c0_i32, %c0_i32_0 : i32, i32, i32
  }
  func.func @transform_5(%arg0: i32, %arg1: i32) -> (i32, i32, i32) {
    %c0_i32 = arith.constant 0 : i32
    %c0_i32_0 = arith.constant 0 : i32
    %c0_i32_1 = arith.constant 0 : i32
    return %arg1, %c0_i32, %c0_i32_0 : i32, i32, i32
  }
  func.func @transform_6(%arg0: i32, %arg1: i32) -> (i32, i32, i32) {
    %c0_i32 = arith.constant 0 : i32
    %c0_i32_0 = arith.constant 0 : i32
    %c0_i32_1 = arith.constant 0 : i32
    return %arg1, %c0_i32, %c0_i32_0 : i32, i32, i32
  }
  func.func @transform_7(%arg0: i32, %arg1: i32) -> (i32, i32, i32) {
    %c0_i32 = arith.constant 0 : i32
    %c0_i32_0 = arith.constant 0 : i32
    %c0_i32_1 = arith.constant 0 : i32
    return %arg1, %c0_i32, %c0_i32_0 : i32, i32, i32
  }
  func.func @transform_8(%arg0: i32, %arg1: i32) -> (i32, i32, i32) {
    %c0_i32 = arith.constant 0 : i32
    %c0_i32_0 = arith.constant 0 : i32
    %c0_i32_1 = arith.constant 0 : i32
    return %arg1, %c0_i32, %c0_i32_0 : i32, i32, i32
  }
  func.func @transform_9(%arg0: i32, %arg1: i32) -> (i32, i32, i32) {
    %c0_i32 = arith.constant 0 : i32
    %c0_i32_0 = arith.constant 0 : i32
    %c0_i32_1 = arith.constant 0 : i32
    return %arg0, %c0_i32, %c0_i32_0 : i32, i32, i32
  }
}

</mosaic_0001>

<bundles_post_ra>
// kernel: tpu_custom_call.1
= control target key start
LH: loop header
LB: loop body
LE: loop exit
PB: predicated region body
PF: predicated region fallthrough
CT: control target
= control target key end

     0   :  { %s2497_s0 = inlined_call_operand.vmem [shape: f32[2,1,8], index: 0, kind: input, shape index: {}]   ;;  %s2498_s1 = inlined_call_operand.vmem [shape: f32[2,8,32], index: 1, kind: input, shape index: {}]   ;;  %s2499_s2 = inlined_call_operand.vmem [shape: bf16[2,4,32,24], index: 2, kind: input, shape index: {}]   ;;  %s2500_s3 = inlined_call_operand.vmem [shape: f32[2,4,1,24], index: 3, kind: input, shape index: {}]   ;;  %s2501_s4 = inlined_call_operand.vmem [shape: bf16[2,32,32], index: 4, kind: input, shape index: {}]   ;;  %s2502_s5 = inlined_call_operand.vmem [shape: bf16[2,32,64], index: 5, kind: input, shape index: {}]   ;;  %s2503_s6 = inlined_call_operand.vmem [shape: f32[2,1,64], index: 6, kind: input, shape index: {}]   ;;  %s2504_s7 = inlined_call_operand.vmem [shape: bf16[2,64,32], index: 7, kind: input, shape index: {}]   ;;  %s2505_s8 = inlined_call_operand.vmem [shape: f32[2,6,32], index: 8, kind: input, shape index: {}]   ;;  %s2506_s9 = inlined_call_operand.hbm [shape: f32[2,8,32], index: 9, kind: output, shape index: {}]  }
   0x1   :  { %2519 = sst [smem:[#allocation15_spill]] %s2498_s1 }
   0x2   :  { %2520 = sst [smem:[#allocation16_spill]] %s2499_s2 }
   0x3   :  { %2521 = sst [smem:[#allocation17_spill]] %s2500_s3 }
   0x4   :  { %2522 = sst [smem:[#allocation18_spill]] %s2501_s4 }
   0x5   :  { %2523 = sst [smem:[#allocation19_spill]] %s2506_s9 }
   0x6   :  { %14 = vsyncpa [#allocation3], 0 }
   0x7   :  { %16 = vsyncpa [#allocation3 + $0x1], 0  ;;  %s2142_s30 = smov 0   ;;  %s2144_s10 = smov 0  }
   0x8   :  { %s2146_s11 = smov 0   ;;  %s2148_s12 = smov 0  }
   0x9   :  { %s2150_s13 = smov 0   ;;  %s2152_s14 = smov 0  }
   0xa   :  { %s2154_s15 = smov 0   ;;  %s2156_s16 = smov 0  }
   0xb LB: > { %2524 = sst [smem:[#allocation5_spill]] %s2054_s30  ;;  %s1664_s17 = sadd.s32 4294967295, %s2082_s16   ;;  %s2082_s16 = sphi %s2156_s16, %s22_s16   ;;  %s2078_s15 = sphi %s2154_s15, %s2553_s15   ;;  %s2074_s14 = sphi %s2152_s14, %s2552_s14   ;;  %s2070_s13 = sphi %s2150_s13, %s2551_s13   ;;  %s2066_s12 = sphi %s2148_s12, %s2550_s12   ;;  %s2062_s11 = sphi %s2146_s11, %s2549_s11   ;;  %s2058_s10 = sphi %s2144_s10, %s2555_s10   ;;  %s2054_s30 = sphi %s2142_s30, %s2554_s30  }
   0xc   : > { %2525 = sst [smem:[#allocation6_spill]] %s2062_s11  ;;  %s1665_s18 = sadd.s32 4294967294, %s2082_s16  }
   0xd   : > { %2526 = sst [smem:[#allocation7_spill]] %s2074_s14  ;;  %s31_s19 = sadd.s32 1, %s2074_s14 }
   0xe   : > { %2527 = sst [smem:[#allocation8_spill]] %s2078_s15  ;;  %p32_p0 = scmp.ge.s32.totalorder %s31_s19, 2 }
   0xf   : > { %2528 = sst [smem:[#allocation9_spill]] %s2082_s16  ;;  %s34_s20 = sadd.s32 1, %s2078_s15 }
  0x10   : > { %p285_p1 = scmp.ne.s32.totalorder %s2062_s11, %s2058_s10  ;;  %p286_p2 = scmp.eq.s32.totalorder %s1664_s17, 3 }
  0x11   : > { %s2557_s19 = smov (%p32_p0, %s31_s19), 0  ;;  %s2559_s20 = smov (!%p32_p0, %s34_s20), %s2078_s15 }
  0x12   : > { %2529 = sst [smem:[#allocation10_spill]] %s2557_s19  ;;  %p2191_p3 = por %p286_p2, %p285_p1 }
  0x13   : > { %p291_p4 = scmp.ne.s32.totalorder %s2058_s10, %s2054_s30  ;;  %p36_p5 = scmp.ge.s32.totalorder %s2559_s20, 2 }
  0x14   : > { %s2530_s21 = scalar_select %p2191_p3, 1, 0 }
  0x15   : > { %p292_p6 = scmp.eq.s32.totalorder %s1665_s18, 3  ;;  %p1668_p7 = scmp.ge.s32.totalorder %s2082_s16, 1 }
  0x16   : > { %2531 = sst [smem:[#allocation11_spill]] %s2530_s21  ;;  %p375_p8 = scmp.lt.s32.totalorder %s2082_s16, 5 }
  0x17   : > { %s2561_s20 = smov (%p36_p5, %s2559_s20), 0  ;;  %p2201_p9 = por %p292_p6, %p291_p4 }
  0x18   : > { %2532 = sst [smem:[#allocation12_spill]] %s2561_s20  ;;  %p376_p10 = pnand %p1668_p7, %p375_p8 }
  0x19   : > { %s2533_s22 = scalar_select %p2201_p9, 1, 0 }
  0x1a   : > { %s272_s23 = ssub.s32 %s2078_s15, %s2561_s20  ;;  %s275_s24 = sadd.s32 1, %s2062_s11 }
  0x1b   : > { %2534 = sst [smem:[#allocation13_spill]] %s2533_s22  ;;  %p273_p11 = scmp.eq.s32.totalorder %s272_s23, 0 }
  0x1c   : > { %379 = sbr.rel (%p376_p10) target bundleno = 2279 (0x8e7), region = 56  ;;  %s2508_s26 = sand.u32 (!%p376_p10), 1, %s2058_s10  }
  0x1d   : > { %s2209_s25 = scalar_select %p273_p11, %s2062_s11, %s275_s24  }
  0x1e   : > { %p444_p12 = scmp.lt.s32.totalorder (!%p376_p10), %s2070_s13, 1  ;;  %s1669_s27 = sshll.u32 (!%p376_p10), %s2508_s26, 3 }
  0x1f   : > { %2535 = sst [smem:[#allocation14_spill]] %s2209_s25  ;;  %p451_p13 = scmp.lt.s32.totalorder (!%p376_p10), %s2066_s12, 1 }
  0x20   : > { %s2536_s1 = sld [smem:[#allocation15_spill]] (!%p376_p10)  ;;  %s2537_s2 = sld [smem:[#allocation16_spill]] (!%p376_p10) }
  0x21   : > { %s2538_s3 = sld [smem:[#allocation17_spill]] (!%p376_p10)  ;;  %s2539_s4 = sld [smem:[#allocation18_spill]] (!%p376_p10) }
  0x22   : > { %p1681_p0 = scmp.ne.s32.totalorder (!%p376_p10), %s2066_s12, 0 }
  0x23   : > { %s2217_s28 = scalar_select %p444_p12, %s2070_s13, 1 }
  0x24   : > { %s2220_s29 = scalar_select %p451_p13, %s2066_s12, 1 }
  0x25   : > { %s1670_s24 = sshll.u32 %s2217_s28, 3  ;;  %vm488_vm0 = vcmask (!%p1681_p0), 261120  }
  0x26   : > { %s450_s19 = scalar_lea.vmem %s2536_s1, %s1670_s24  ;;  %s1723_s15 = sshll.u32 %s2220_s29, 6 }
  0x27   : > { %s2234_s11 = scalar_lea.vmem %s2537_s2, %s1723_s15  ;;  %s1673_s22 = sshll.u32 %s2220_s29, 2  ;;  %v487_v0 = vld [vmem:[%s450_s19] sm:$0xff] (!%p1681_p0) }
  0x28   : > { %s2240_s30 = scalar_lea.vmem %s2538_s3, %s1673_s22  ;;  %s1724_s16 = sshll.u32 %s2220_s29, 4 }
  0x29   : > { %s2246_s21 = scalar_lea.vmem %s2539_s4, %s1724_s16  ;;  %s2251_s24 = scalar_lea.vmem %s2502_s5, %s1724_s16 }
  0x2a   : > { %s472_s25 = scalar_lea.vmem %s2503_s6, %s2220_s29  ;;  %s1726_s1 = sshll.u32 %s2220_s29, 5 }
  0x2b   : > { %s2261_s22 = scalar_lea.vmem %s2504_s7, %s1726_s1  ;;  %s1680_s18 = sshll.u32 %s2220_s29, 3 }
  0x2c   : > { %s2267_s23 = scalar_lea.vmem %s2505_s8, %s1680_s18  ;;  %s2269_s4 = scalar_lea.vmem [#allocation2], %s1669_s27 }
  0x2d   : > { %486 = sbr.rel (%p1681_p0) target bundleno = 52 (0x34), region = 60  ;;  %489 = vst.msk [vmem:[%s2269_s4] sm:$0xff] (!%p1681_p0), %vm488_vm0, %v487_v0 }
  0x34 PF: > { %v1952_v1 = vld [vmem:[%s2234_s11] sm:$0xff]   ;;  %v2084_v2 = vmov 0.0   ;;  %v1953_v3 = vld [vmem:[%s2234_s11 + $0x8] sm:$0xff]   ;;  %vm2085_vm1 = vmmov 0   ;;  %v1954_v7 = vld [vmem:[%s2234_s11 + $0x10] sm:$0xff]   ;;  %vm549_vm2 = vcmask 261120  }
  0x35   : > { %1766 = vmatprep.subr.bf16.mxu1 %v2084_v2  ;;  %1782 = vmatprep.subr.bf16.mxu0 %v2084_v2  ;;  %v2280_v4 = vld [vmem:[%s2269_s4] sm:$0xff]  ;;  %v1956_v9 = vld [vmem:[%s2234_s11 + $0x18] sm:$0xff]   ;;  %v1958_v10 = vld [vmem:[%s2234_s11 + $0x30] sm:$0xff]   ;;  %s2086_s1 = smov 120   ;;  %vm771_vm3 = vcmask 64512   ;;  %vm1018_vm4 = vcmask 1043456  }
  0x36   : > { %1767 = vmatpush3.bf16.msra.mxu1 %v1952_v1  ;;  %1770 = vmatprep.mubr.msk.bf16.mxu1 %vm2085_vm1, %v2084_v2  ;;  %v1955_v5 = vld [vmem:[%s2234_s11 + $0x20] sm:$0xff]   ;;  %v491_v6 = vpack.c.bf16 %v2280_v4, %v2280_v4  ;;  %v1957_v8 = vld [vmem:[%s2234_s11 + $0x28] sm:$0xff]   ;;  %v1959_v11 = vld [vmem:[%s2234_s11 + $0x38] sm:$0xff]   ;;  %s2087_s11 = smov 112   ;;  %s2088_s12 = smov 16   ;;  %vm1219_vm5 = vcmask 130048  }
  0x37   : > { %1768 = vmatprep.subr.bf16.mxu1 %v2084_v2  ;;  %1786 = vmatprep.mubr.msk.bf16.mxu0 %vm2085_vm1, %v2084_v2  ;;  %v1682_v12 = vld [vmem:[%s2240_s30] ss:$0 sm:$0xff]  ;;  %v1684_v17 = vld [vmem:[%s2240_s30 + $0x2] ss:$0 sm:$0xff]  ;;  %v1683_v23 = vld [vmem:[%s2240_s30 + $0x1] ss:$0 sm:$0xff] }
  0x38   : > { %1783 = vmatpush3.bf16.msra.mxu0 %v1955_v5  ;;  %v1685_v33 = vld [vmem:[%s2240_s30 + $0x3] ss:$0 sm:$0xff]  ;;  %s2540_s30 = scalar_lea.vmem %s2497_s0, %s2217_s28  ;;  %s2089_s16 = smov 8   ;;  %vm1221_vm6 = vcmask 195584   ;;  %vm1419_vm7 = vcmask 523264  }
  0x39   : > { %1784 = vmatprep.subr.bf16.mxu0 %v2084_v2  ;;  %v1698_v56 = vld [vmem:[%s2540_s30] ss:$0 sm:$0xff]  ;;  %s2090_s19 = smov 24   ;;  %s1720_s29 = sshll.u32 %s2070_s13, 7 }
  0x3a   : > { %1769 = vmatpush3.bf16.msra.mxu1 %v1953_v3  ;;  %s1504_s20 = sshll.u32 %s2269_s4, 4  ;;  %s2542_s14 = sld [smem:[#allocation19_spill]]  ;;  %s2442_s20 = int_to_ptr.vmem [resolvable:$true] %s1504_s20 }
  0x3b   : > { %1774 = vmatprep.subr.bf16.mxu1 %v2084_v2  ;;  %s2544_s17 = sand.u32 1, %s2058_s10   ;;  %s1988_s18 = scalar_lea.vmem %s2442_s20, 128 }
  0x3c   : > { %1785 = vmatpush3.bf16.msra.mxu0 %v1957_v8  ;;  %p1989_p1 = scmp.ne.s32.totalorder %s2442_s20, %s1988_s18  ;;  %s2091_s13 = smov [#allocation2]  }
  0x3d   : > { %1771 = vmatmul.mubr.msk.bf16.vlgmr.msra.gmra.mrb[0].mxu1 %vm549_vm2, %v491_v6  ;;  %1798 = vmatprep.subr.bf16.mxu0 %v2084_v2  ;;  %s1992_s9 = sshll.u32 %s2091_s13, 4  ;;  %s1993_s9 = int_to_ptr.vmem [resolvable:$false] %s1992_s9 }
  0x3e   : > { %1775 = vmatpush3.bf16.msra.mxu1 %v1954_v7  ;;  %1778 = vmatprep.mubr.msk.bf16.mxu1 %vm2085_vm1, %v2084_v2  ;;  %p1990_p2 = pnand %p1989_p1, %p2191_p3  ;;  %p1995_p5 = scmp.lt.s32.totalorder %s2442_s20, %s1993_s9 }
  0x3f   : > { %1776 = vmatprep.subr.bf16.mxu1 %v2084_v2  ;;  %1787 = vmatmul.mubr.msk.bf16.vlgmr.msra.gmra.mrb[0].mxu0 %vm549_vm2, %v491_v6 }
  0x40   : > { %1800 = vmatprep.mubr.msk.bf16.mxu0 %vm2085_vm1, %v2084_v2  ;;  %s2440_s15 = scalar_lea.hbm %s2542_s14, %s1720_s29  ;;  %p1991_p4 = pneg %p1990_p2 }
  0x42   : > { %1777 = vmatpush3.bf16.msra.mxu1 %v1956_v9 }
  0x43   : > { %1790 = vmatprep.subr.bf16.mxu1 %v2084_v2 }
  0x45   : > { %1779 = vmatmul.mubr.msk.bf16.vlgmr.msra.gmra.mrb[4].mxu1 %vm549_vm2, %v491_v6 }
  0x46   : > { %1791 = vmatpush3.bf16.msra.mxu1 %v1958_v10  ;;  %1794 = vmatprep.mubr.msk.bf16.mxu1 %vm2085_vm1, %v2084_v2 }
  0x47   : > { %1792 = vmatprep.subr.bf16.mxu1 %v2084_v2 }
  0x4a   : > { %1793 = vmatpush3.bf16.msra.mxu1 %v1959_v11 }
  0x4b   : > { %1804 = vmatprep.subr.bf16.mxu1 %v2084_v2 }
  0x4d   : > { %1795 = vmatmul.mubr.msk.bf16.vlgmr.msra.gmra.mrb[8].mxu1 %vm549_vm2, %v491_v6 }
  0x4e   : > { %1806 = vmatprep.mubr.msk.bf16.mxu1 %vm2085_vm1, %v2084_v2 }
 0x110   : > { %v587_v13 = vpop.f32.mrb[0].mxu1 }
 0x111   : > { %v588_v14 = vadd.f32 %v1682_v12, %v587_v13  ;;  %v1772_v15 = vpop.f32.mrb[1].mxu1 }
 0x112   : > { %v590_v16 = vpop.f32.mrb[2].mxu1  ;;  %v691_v20 = vpop.f32.mrb[0].mxu0 }
 0x113   : > { %v1773_v18 = vpop.f32.mrb[3].mxu1  ;;  %v2314_v19 = vpack.c.bf16 %v588_v14, %v588_v14  ;;  %v692_v21 = vadd.f32 %v1684_v17, %v691_v20  ;;  %v1788_v22 = vpop.f32.mrb[1].mxu0  ;;  %v749_v42 = vmul.f32 0.35355338, %v588_v14 }
 0x114   : > { %v694_v24 = vpop.f32.mrb[2].mxu0 }
 0x115   : > { %769 = vrot.lane.b32.xlu0 %v2314_v19, %s2086_s1  ;;  %v1789_v25 = vpop.f32.mrb[3].mxu0  ;;  %v2318_v26 = vpack.c.bf16 %v692_v21, %v692_v21  ;;  %v753_v44 = vpack.c.bf16 %v749_v42, %v749_v42  ;;  %v751_v49 = vmul.f32 0.35355338, %v692_v21 }
 0x117   : > { %868 = vrot.lane.b32.xlu1 %v2318_v26, %s2086_s1  ;;  %v755_v51 = vpack.c.bf16 %v751_v49, %v751_v49 }
 0x118   : > { %v639_v27 = vpop.f32.mrb[4].mxu1 }
 0x119   : > { %v640_v28 = vadd.f32 %v1683_v23, %v639_v27  ;;  %v1780_v29 = vpop.f32.mrb[5].mxu1 }
 0x11a   : > { %v642_v30 = vpop.f32.mrb[6].mxu1 }
 0x11b   : > { %v2321_v31 = vpack.c.bf16 %v640_v28, %v640_v28  ;;  %v1781_v32 = vpop.f32.mrb[7].mxu1  ;;  %v750_v48 = vmul.f32 0.35355338, %v640_v28 }
 0x11d   : > { %819 = vrot.lane.b32.xlu0 %v2321_v31, %s2086_s1  ;;  %v754_v50 = vpack.c.bf16 %v750_v48, %v750_v48 }
 0x120   : > { %v743_v34 = vpop.f32.mrb[8].mxu1 }
 0x121   : > { %v744_v35 = vadd.f32 %v1685_v33, %v743_v34  ;;  %v1796_v36 = vpop.f32.mrb[9].mxu1 }
 0x122   : > { %v746_v37 = vpop.f32.mrb[10].mxu1 }
 0x123   : > { %v2325_v38 = vpack.c.bf16 %v744_v35, %v744_v35  ;;  %v1797_v39 = vpop.f32.mrb[11].mxu1  ;;  %v752_v54 = vmul.f32 0.35355338, %v744_v35 }
 0x125   : > { %917 = vrot.lane.b32.xlu1 %v2325_v38, %s2086_s1  ;;  %v756_v55 = vpack.c.bf16 %v752_v54, %v752_v54 }
 0x187   : > { %v770_v40 = vpop.permute.xlu0 %769 }
 0x188   : > { %v776_v41 = vsel %vm771_vm3, %v770_v40, 0 }
 0x189   : > { %1799 = vmatpush3.bf16.xpose.msra.mxu0 %v776_v41  ;;  %v869_v43 = vpop.permute.xlu1 %868 }
 0x18a   : > { %1810 = vmatprep.subr.bf16.mxu0 %v2084_v2  ;;  %v874_v45 = vsel %vm771_vm3, %v869_v43, 0 }
 0x18f   : > { %v820_v46 = vpop.permute.xlu0 %819 }
 0x190   : > { %v825_v47 = vsel %vm771_vm3, %v820_v46, 0  ;;  %1801 = vmatmul.mubr.msk.bf16.vlgmr.msra.gmra.mrb[4].mxu0 %vm771_vm3, %v753_v44 }
 0x191   : > { %1805 = vmatpush3.bf16.xpose.msra.mxu1 %v825_v47  ;;  %1811 = vmatpush3.bf16.xpose.msra.mxu0 %v874_v45 }
 0x192   : > { %1812 = vmatprep.mubr.msk.bf16.mxu0 %vm2085_vm1, %v2084_v2  ;;  %1816 = vmatprep.subr.bf16.mxu1 %v2084_v2 }
 0x193   : > { %1822 = vmatprep.subr.bf16.mxu0 %v2084_v2 }
 0x197   : > { %v918_v52 = vpop.permute.xlu1 %917 }
 0x198   : > { %v923_v53 = vsel %vm771_vm3, %v918_v52, 0  ;;  %1807 = vmatmul.mubr.msk.bf16.vlgmr.msra.gmra.mrb[12].mxu1 %vm771_vm3, %v754_v50  ;;  %1813 = vmatmul.mubr.msk.bf16.vlgmr.msra.gmra.mrb[8].mxu0 %vm771_vm3, %v755_v51 }
 0x199   : > { %1817 = vmatpush3.bf16.xpose.msra.mxu1 %v923_v53  ;;  %1818 = vmatprep.mubr.msk.bf16.mxu1 %vm2085_vm1, %v2084_v2 }
 0x19a   : > { %1824 = vmatprep.mubr.msk.bf16.mxu0 %vm2085_vm1, %v2084_v2  ;;  %1828 = vmatprep.subr.bf16.mxu1 %v2084_v2 }
 0x1a0   : > { %1819 = vmatmul.mubr.msk.bf16.vlgmr.msra.gmra.mrb[16].mxu1 %vm771_vm3, %v756_v55 }
 0x1a1   : > { %1830 = vmatprep.mubr.msk.bf16.mxu1 %vm2085_vm1, %v2084_v2 }
 0x263   : > { %v812_v57 = vpop.f32.mrb[4].mxu0 }
 0x264   : > { %v813_v58 = vadd.f32 %v1698_v56, %v812_v57  ;;  %v1802_v59 = vpop.f32.mrb[5].mxu0 }
 0x265   : > { %v815_v60 = vpop.f32.mrb[6].mxu0 }
 0x266   : > { %v1803_v61 = vpop.f32.mrb[7].mxu0  ;;  %v965_v62 = vsel %vm771_vm3, %v813_v58, -inf }
 0x267   : > { %966 = vmax.xlane.f32.xlu0 %v965_v62 }
 0x26b   : > { %v861_v63 = vpop.f32.mrb[12].mxu1  ;;  %v910_v0 = vpop.f32.mrb[8].mxu0 }
 0x26c   : > { %v862_v1 = vadd.f32 %v1698_v56, %v861_v63  ;;  %v911_v3 = vadd.f32 %v1698_v56, %v910_v0  ;;  %v1808_v5 = vpop.f32.mrb[13].mxu1  ;;  %v1814_v6 = vpop.f32.mrb[9].mxu0  ;;  %v1960_v63 = vld [vmem:[%s2246_s21] sm:$0xff]  }
 0x26d   : > { %v864_v7 = vpop.f32.mrb[14].mxu1  ;;  %v913_v8 = vpop.f32.mrb[10].mxu0  ;;  %v1961_v6 = vld [vmem:[%s2246_s21 + $0x8] sm:$0xff]  }
 0x26e   : > { %v1809_v9 = vpop.f32.mrb[15].mxu1  ;;  %v1815_v10 = vpop.f32.mrb[11].mxu0  ;;  %v971_v11 = vsel %vm771_vm3, %v911_v3, -inf  ;;  %v968_v12 = vsel %vm771_vm3, %v862_v1, -inf }
 0x26f   : > { %972 = vmax.xlane.f32.xlu0 %v971_v11  ;;  %969 = vmax.xlane.f32.xlu1 %v968_v12 }
 0x273   : > { %v959_v13 = vpop.f32.mrb[16].mxu1 }
 0x274   : > { %v960_v14 = vadd.f32 %v1698_v56, %v959_v13  ;;  %v1820_v15 = vpop.f32.mrb[17].mxu1 }
 0x275   : > { %v962_v16 = vpop.f32.mrb[18].mxu1 }
 0x276   : > { %v1821_v17 = vpop.f32.mrb[19].mxu1  ;;  %v974_v18 = vsel %vm771_vm3, %v960_v14, -inf }
 0x277   : > { %975 = vmax.xlane.f32.xlu0 %v974_v18 }
 0x280   : > { %1013 = vrot.lane.b32.xlu1 %v2314_v19, %s2087_s11 }
 0x2f4   : > { %v967_v20 = vpop.xlane.xlu0 %966 }
 0x2f5   : > { %v977_v21 = vsub.f32 %v813_v58, %v967_v20 }
 0x2f7   : > { %v981_v22 = vmul.f32 1.442695, %v977_v21 }
 0x2f9   : > { %1968 = vpow2.f32 %v981_v22 }
 0x2fc   : > { %v973_v23 = vpop.xlane.xlu0 %972  ;;  %v970_v24 = vpop.xlane.xlu1 %969 }
 0x2fd   : > { %v979_v25 = vsub.f32 %v911_v3, %v973_v23  ;;  %v978_v27 = vsub.f32 %v862_v1, %v970_v24 }
 0x2ff   : > { %v985_v28 = vmul.f32 1.442695, %v979_v25  ;;  %v983_v29 = vmul.f32 1.442695, %v978_v27 }
 0x300   : > { %v1014_v30 = vpop.permute.xlu1 %1013 }
 0x301   : > { %1970 = vpow2.f32 %v985_v28  ;;  %v1020_v32 = vsel %vm1018_vm4, %v1014_v30, 0  ;;  %v1228_v28 = vlaneseq }
 0x302   : > { %1972 = vpow2.f32 %v983_v29  ;;  %1823 = vmatpush3.bf16.msra.mxu0 %v1020_v32  ;;  %v2401_v32 = vld [vmem:[%s2267_s23] sm:$0x3f]  ;;  %s1994_s23 = scalar_lea.vmem %s1993_s9, 256 }
 0x303   : > { %v1969_v33 = vpop.eup %1968  ;;  %1834 = vmatprep.subr.bf16.mxu0 %v2084_v2  ;;  %v2397_v29 = vshrl.u32 %v1228_v28, 7  ;;  %p1996_p6 = scmp.lt.s32.totalorder %s1994_s23, %s1988_s18 }
 0x304   : > { %v976_v19 = vpop.xlane.xlu0 %975  ;;  %v989_v34 = vsel %vm771_vm3, %v1969_v33, 0.0 }
 0x305   : > { %v980_v35 = vsub.f32 %v960_v14, %v976_v19  ;;  %990 = vadd.xlane.f32.xlu1 %v989_v34  ;;  %v1230_v30 = vsub.s32 0, %v2397_v29  ;;  %v1486_v28 = vsub.s32 5, %v2397_v29  ;;  %p1997_p7 = por %p1996_p6, %p1995_p5 }
 0x307   : > { %v987_v36 = vmul.f32 1.442695, %v980_v35  ;;  %p1998_p8 = pnand %p1997_p7, %p1991_p4 }
 0x309   : > { %1974 = vpow2.f32 %v987_v36 }
 0x30b   : > { %v1971_v37 = vpop.eup %1970 }
 0x30c   : > { %v1973_v39 = vpop.eup %1972  ;;  %v995_v40 = vsel %vm771_vm3, %v1971_v37, 0.0 }
 0x30d   : > { %996 = vadd.xlane.f32.xlu1 %v995_v40  ;;  %v992_v41 = vsel %vm771_vm3, %v1973_v39, 0.0 }
 0x30e   : > { %993 = vadd.xlane.f32.xlu0 %v992_v41 }
 0x313   : > { %v1975_v42 = vpop.eup %1974 }
 0x314   : > { %v998_v43 = vsel %vm771_vm3, %v1975_v42, 0.0 }
 0x315   : > { %999 = vadd.xlane.f32.xlu0 %v998_v43  ;;  %v1962_v43 = vld [vmem:[%s2251_s24] sm:$0xff]  }
 0x31e   : > { %1110 = vrot.lane.b32.xlu1 %v2318_v26, %s2087_s11 }
 0x322   : > { %1158 = vrot.lane.b32.xlu1 %v2325_v38, %s2087_s11 }
 0x32b   : > { %1062 = vrot.lane.b32.xlu0 %v2321_v31, %s2087_s11 }
 0x392   : > { %v991_v44 = vpop.xlane.xlu1 %990 }
 0x393   : > { %1976 = vrcp.f32 %v991_v44  ;;  %v1963_v44 = vld [vmem:[%s2251_s24 + $0x8] sm:$0xff]  }
 0x39a   : > { %v997_v45 = vpop.xlane.xlu1 %996 }
 0x39b   : > { %1978 = vrcp.f32 %v997_v45  ;;  %v994_v46 = vpop.xlane.xlu0 %993  ;;  %v1964_v45 = vld [vmem:[%s2261_s22] sm:$0xff]  }
 0x39c   : > { %1980 = vrcp.f32 %v994_v46  ;;  %v1965_v46 = vld [vmem:[%s2261_s22 + $0x8] sm:$0xff]  }
 0x39d   : > { %v1977_v47 = vpop.eup %1976 }
 0x39e   : > { %v1005_v48 = vmul.f32 %v1977_v47, %v1969_v33  ;;  %v1111_v49 = vpop.permute.xlu1 %1110  ;;  %v1231_v33 = vrot.slane %v2401_v32, %v1230_v30 }
 0x39f   : > { %v1116_v51 = vsel %vm1018_vm4, %v1111_v49, 0 }
 0x3a0   : > { %v1009_v50 = vpack.c.bf16 %v1005_v48, %v1005_v48 }
 0x3a2   : > { %1825 = vmatmul.mubr.msk.bf16.vlgmr.msra.gmra.mrb[12].mxu0 %vm771_vm3, %v1009_v50  ;;  %v1000_v26 = vpop.xlane.xlu0 %999  ;;  %v1159_v56 = vpop.permute.xlu1 %1158 }
 0x3a3   : > { %1835 = vmatpush3.bf16.msra.mxu0 %v1116_v51  ;;  %1982 = vrcp.f32 %v1000_v26  ;;  %1836 = vmatprep.mubr.msk.bf16.mxu0 %vm2085_vm1, %v2084_v2  ;;  %v1164_v59 = vsel %vm1018_vm4, %v1159_v56, 0 }
 0x3a4   : > { %1846 = vmatprep.subr.bf16.mxu0 %v2084_v2 }
 0x3a5   : > { %v1979_v31 = vpop.eup %1978 }
 0x3a6   : > { %v1981_v38 = vpop.eup %1980  ;;  %v1007_v52 = vmul.f32 %v1979_v31, %v1971_v37  ;;  %v1063_v53 = vpop.permute.xlu0 %1062  ;;  %v1306_v31 = vsub.s32 1, %v2397_v29 }
 0x3a7   : > { %v1006_v54 = vmul.f32 %v1981_v38, %v1973_v39  ;;  %v1068_v55 = vsel %vm1018_vm4, %v1063_v53, 0  ;;  %v1311_v38 = vsub.s32 2, %v2397_v29 }
 0x3a8   : > { %1829 = vmatpush3.bf16.msra.mxu1 %v1068_v55  ;;  %v1011_v57 = vpack.c.bf16 %v1007_v52, %v1007_v52  ;;  %v1307_v53 = vrot.slane %v2401_v32, %v1306_v31 }
 0x3a9   : > { %v1010_v58 = vpack.c.bf16 %v1006_v54, %v1006_v54  ;;  %1840 = vmatprep.subr.bf16.mxu1 %v2084_v2  ;;  %v1312_v56 = vrot.slane %v2401_v32, %v1311_v38 }
 0x3aa   : > { %1837 = vmatmul.mubr.msk.bf16.vlgmr.msra.gmra.mrb[16].mxu0 %vm771_vm3, %v1011_v57 }
 0x3ab   : > { %1831 = vmatmul.mubr.msk.bf16.vlgmr.msra.gmra.mrb[20].mxu1 %vm771_vm3, %v1010_v58  ;;  %1850 = vmatprep.mubr.msk.bf16.mxu0 %vm2085_vm1, %v2084_v2 }
 0x3ac   : > { %1841 = vmatpush3.bf16.msra.mxu1 %v1164_v59  ;;  %1842 = vmatprep.mubr.msk.bf16.mxu1 %vm2085_vm1, %v2084_v2 }
 0x3ad   : > { %v1983_v60 = vpop.eup %1982  ;;  %1854 = vmatprep.subr.bf16.mxu1 %v2084_v2  ;;  %1847 = vmatpush3.bf16.msra.mxu0 %v1960_v63 }
 0x3ae   : > { %v1008_v61 = vmul.f32 %v1983_v60, %v1975_v42  ;;  %1848 = vmatprep.subr.bf16.mxu0 %v2084_v2  ;;  %v1966_v60 = vld [vmem:[%s2261_s22 + $0x10] sm:$0xff]  }
 0x3b0   : > { %v1012_v62 = vpack.c.bf16 %v1008_v61, %v1008_v61  ;;  %v1967_v61 = vld [vmem:[%s2261_s22 + $0x18] sm:$0xff]   ;;  %s1491_s22 = scalar_lea.sflag [#allocation3], %s2544_s17 }
 0x3b1   : > { %1849 = vmatpush3.bf16.msra.mxu0 %v1961_v6 }
 0x3b2   : > { %1862 = vmatprep.subr.bf16.mxu0 %v2084_v2 }
 0x3b3   : > { %1843 = vmatmul.mubr.msk.bf16.vlgmr.msra.gmra.mrb[24].mxu1 %vm771_vm3, %v1012_v62  ;;  %v1710_v62 = vld [vmem:[%s472_s25] ss:$0 sm:$0xff]  ;;  %s2543_s25 = smov %s2542_s14 }
 0x3b4   : > { %1858 = vmatprep.mubr.msk.bf16.mxu1 %vm2085_vm1, %v2084_v2  ;;  %1855 = vmatpush3.bf16.msra.mxu1 %v1962_v43 }
 0x3b5   : > { %1856 = vmatprep.subr.bf16.mxu1 %v2084_v2 }
 0x3b8   : > { %1857 = vmatpush3.bf16.msra.mxu1 %v1963_v44 }
 0x475   : > { %v1056_v0 = vpop.f32.mrb[12].mxu0 }
 0x476   : > { %v1826_v1 = vpop.f32.mrb[13].mxu0 }
 0x477   : > { %v1059_v3 = vpop.f32.mrb[14].mxu0 }
 0x478   : > { %v1827_v5 = vpop.f32.mrb[15].mxu0 }
 0x47d   : > { %v1152_v7 = vpop.f32.mrb[16].mxu0 }
 0x47e   : > { %1211 = vrot.lane.b32.xlu1 %v1152_v7, %s2088_s12  ;;  %v1104_v8 = vpop.f32.mrb[20].mxu1  ;;  %v1838_v9 = vpop.f32.mrb[17].mxu0 }
 0x47f   : > { %v1155_v10 = vpop.f32.mrb[18].mxu0  ;;  %1207 = vrot.lane.b32.xlu0 %v1104_v8, %s2089_s16  ;;  %v1832_v11 = vpop.f32.mrb[21].mxu1  ;;  %v1393_v8 = vsub.s32 3, %v2397_v29 }
 0x480   : > { %v1107_v12 = vpop.f32.mrb[22].mxu1  ;;  %v1839_v13 = vpop.f32.mrb[19].mxu0 }
 0x481   : > { %v1833_v14 = vpop.f32.mrb[23].mxu1 }
 0x486   : > { %v1200_v15 = vpop.f32.mrb[24].mxu1 }
 0x487   : > { %1215 = vrot.lane.b32.xlu0 %v1200_v15, %s2090_s19  ;;  %v1844_v16 = vpop.f32.mrb[25].mxu1 }
 0x488   : > { %v1203_v17 = vpop.f32.mrb[26].mxu1 }
 0x489   : > { %v1845_v18 = vpop.f32.mrb[27].mxu1 }
 0x4f0   : > { %v1212_v22 = vpop.permute.xlu1 %1211 }
 0x4f1   : > { %v1208_v20 = vpop.permute.xlu0 %1207 }
 0x4f2   : > { %v1218_v21 = vsel %vm771_vm3, %v1056_v0, %v1208_v20 }
 0x4f3   : > { %v1220_v23 = vsel %vm1219_vm5, %v1218_v21, %v1212_v22 }
 0x4f9   : > { %v1216_v24 = vpop.permute.xlu0 %1215 }
 0x4fa   : > { %v1222_v25 = vsel %vm1221_vm6, %v1220_v23, %v1216_v24 }
 0x4fb   : > { %v1223_v27 = vpack.c.bf16 %v1222_v25, %v1222_v25 }
 0x4fd   : > { %1851 = vmatmul.mubr.msk.bf16.vlgmr.msra.gmra.mrb[20].mxu0 %vm549_vm2, %v1223_v27  ;;  %v1481_v27 = vsub.s32 4, %v2397_v29 }
 0x4fe   : > { %1870 = vmatprep.mubr.msk.bf16.mxu0 %vm2085_vm1, %v2084_v2  ;;  %1863 = vmatpush3.bf16.msra.mxu0 %v1964_v45 }
 0x4ff   : > { %1864 = vmatprep.subr.bf16.mxu0 %v2084_v2 }
 0x502   : > { %1865 = vmatpush3.bf16.msra.mxu0 %v1965_v46 }
 0x503   : > { %1866 = vmatprep.subr.bf16.mxu0 %v2084_v2 }
 0x506   : > { %1867 = vmatpush3.bf16.msra.mxu0 %v1966_v60 }
 0x507   : > { %1868 = vmatprep.subr.bf16.mxu0 %v2084_v2  ;;  %v1394_v2 = vrot.slane %v2401_v32, %v1393_v8 }
 0x50a   : > { %1869 = vmatpush3.bf16.msra.mxu0 %v1967_v61 }
 0x5d0   : > { %v1281_v19 = vpop.f32.mrb[20].mxu0 }
 0x5d1   : > { %v1282_v34 = vadd.f32 %v1281_v19, %v1231_v33  ;;  %v1852_v35 = vpop.f32.mrb[21].mxu0  ;;  %v1482_v33 = vrot.slane %v2401_v32, %v1481_v27 }
 0x5d2   : > { %v1284_v36 = vpop.f32.mrb[22].mxu0  ;;  %v1487_v35 = vrot.slane %v2401_v32, %v1486_v28 }
 0x5d3   : > { %v1287_v37 = vadd.f32 %v1282_v34, %v2280_v4  ;;  %v1853_v39 = vpop.f32.mrb[23].mxu0 }
 0x5d5   : > { %v1288_v40 = vsel %vm549_vm2, %v1287_v37, 0.0  ;;  %v1293_v41 = vmul.f32 %v1287_v37, %v1287_v37 }
 0x5d6   : > { %1289 = vadd.xlane.f32.xlu1 %v1288_v40 }
 0x5d7   : > { %v1294_v42 = vsel %vm549_vm2, %v1293_v41, 0.0 }
 0x5d8   : > { %1295 = vadd.xlane.f32.xlu0 %v1294_v42 }
 0x663   : > { %v1290_v4 = vpop.xlane.xlu1 %1289 }
 0x664   : > { %v1292_v47 = vmul.f32 0.03125, %v1290_v4 }
 0x665   : > { %v1296_v48 = vpop.xlane.xlu0 %1295 }
 0x666   : > { %v1298_v49 = vmul.f32 %v1292_v47, %v1292_v47  ;;  %v1297_v50 = vmul.f32 0.03125, %v1296_v48  ;;  %v1300_v52 = vsub.f32 %v1287_v37, %v1292_v47 }
 0x668   : > { %v1299_v51 = vsub.f32 %v1297_v50, %v1298_v49 }
 0x66a   : > { %v1301_v26 = vadd.f32 1e-05, %v1299_v51 }
 0x66c   : > { %1984 = vrsqrt.f32 %v1301_v26 }
 0x676   : > { %v1985_v54 = vpop.eup %1984 }
 0x677   : > { %v1303_v55 = vmul.f32 %v1985_v54, %v1300_v52 }
 0x679   : > { %v1308_v57 = vmul.f32 %v1307_v53, %v1303_v55 }
 0x67b   : > { %v1313_v58 = vadd.f32 %v1312_v56, %v1308_v57 }
 0x67d   : > { %v1314_v59 = vpack.c.bf16 %v1313_v58, %v1313_v58 }
 0x67f   : > { %1859 = vmatmul.mubr.msk.bf16.vlgmr.msra.gmra.mrb[28].mxu1 %vm549_vm2, %v1314_v59 }
 0x752   : > { %v1375_v63 = vpop.f32.mrb[28].mxu1 }
 0x753   : > { %v1376_v0 = vadd.f32 %v1710_v62, %v1375_v63  ;;  %v1860_v1 = vpop.f32.mrb[29].mxu1 }
 0x754   : > { %v1378_v3 = vpop.f32.mrb[30].mxu1 }
 0x755   : > { %v1381_v5 = vmax.f32 %v1376_v0, 0.0  ;;  %v1861_v6 = vpop.f32.mrb[31].mxu1 }
 0x757   : > { %v1382_v7 = vpack.c.bf16 %v1381_v5, %v1381_v5 }
 0x759   : > { %1871 = vmatmul.mubr.msk.bf16.vlgmr.msra.gmra.mrb[24].mxu0 %vm1419_vm7, %v1382_v7 }
 0x82c   : > { %v1457_v9 = vpop.f32.mrb[24].mxu0 }
 0x82d   : > { %v1458_v10 = vadd.f32 %v1457_v9, %v1394_v2  ;;  %v1872_v11 = vpop.f32.mrb[25].mxu0 }
 0x82e   : > { %v1460_v12 = vpop.f32.mrb[26].mxu0 }
 0x82f   : > { %v1463_v13 = vadd.f32 %v1458_v10, %v1313_v58  ;;  %v1873_v14 = vpop.f32.mrb[27].mxu0 }
 0x831   : > { %v1464_v15 = vsel %vm549_vm2, %v1463_v13, 0.0  ;;  %v1468_v16 = vmul.f32 %v1463_v13, %v1463_v13 }
 0x832   : > { %1465 = vadd.xlane.f32.xlu0 %v1464_v15 }
 0x833   : > { %v1469_v17 = vsel %vm549_vm2, %v1468_v16, 0.0 }
 0x834   : > { %1470 = vadd.xlane.f32.xlu1 %v1469_v17 }
 0x8bf   : > { %v1466_v18 = vpop.xlane.xlu0 %1465 }
 0x8c0   : > { %v1467_v20 = vmul.f32 0.03125, %v1466_v18 }
 0x8c1   : > { %v1471_v21 = vpop.xlane.xlu1 %1470 }
 0x8c2   : > { %v1473_v22 = vmul.f32 %v1467_v20, %v1467_v20  ;;  %v1472_v23 = vmul.f32 0.03125, %v1471_v21  ;;  %v1475_v30 = vsub.f32 %v1463_v13, %v1467_v20 }
 0x8c4   : > { %v1474_v24 = vsub.f32 %v1472_v23, %v1473_v22 }
 0x8c6   : > { %v1476_v25 = vadd.f32 1e-05, %v1474_v24 }
 0x8c8   : > { %1986 = vrsqrt.f32 %v1476_v25 }
 0x8d2   : > { %v1987_v19 = vpop.eup %1986 }
 0x8d3   : > { %v1478_v34 = vmul.f32 %v1987_v19, %v1475_v30 }
 0x8d5   : > { %v1483_v36 = vmul.f32 %v1482_v33, %v1478_v34 }
 0x8d7   : > { %v1488_v37 = vadd.f32 %v1487_v35, %v1483_v36 }
 0x8d9   : > { %1489 = vst.msk [vmem:[%s2269_s4] sm:$0xff] %vm549_vm2, %v1488_v37 }
 0x8da   : > { %2001 = shalt.err (!%p1998_p8)
}
 0x8db   : > { %s2002_s4 = scalar_lea.hbm %s2440_s15, 128  ;;  %s2006_s3 = scalar_lea.hbm %s2543_s25, 256 }
 0x8dc   : > { %p2003_p10 = scmp.ne.s32.totalorder %s2440_s15, %s2002_s4  ;;  %p2007_p13 = scmp.lt.u32.totalorder %s2440_s15, %s2543_s25 }
 0x8dd   : > { %p2008_p0 = scmp.lt.u32.totalorder %s2006_s3, %s2002_s4  ;;  %p2010_p2 = scmp.lt.u32.totalorder %s2002_s4, %s2440_s15 }
 0x8de   : > { %p2004_p11 = pnand %p2003_p10, %p2191_p3 }
 0x8df   : > { %p2009_p1 = por %p2008_p0, %p2007_p13 }
 0x8e0   : > { %p2005_p12 = pneg %p2004_p11 }
 0x8e1   : > { %p2011_p4 = por %p2010_p2, %p2009_p1 }
 0x8e3   : > { %p2012_p5 = pnand %p2011_p4, %p2005_p12 }
 0x8e5   : > { %2015 = shalt.err (!%p2012_p5)
}
 0x8e6   : > { %1874 = dma.vmem_to_hbm [thread:$0]  (%p2191_p3), %s2442_s20, 128, %s2440_s15, %s1491_s22  }
 0x8e7 PF: > { %s2545_s12 = sld [smem:[#allocation9_spill]]  ;;  %s2546_s16 = sld [smem:[#allocation5_spill]] }
 0x8ed   : > { %p1880_p6 = scmp.ge.s32.totalorder %s2545_s12, 2  ;;  %s1516_s21 = sand.u32 1, %s2546_s16  }
 0x8ee   : > { %s1517_s27 = scalar_lea.sflag [#allocation3], %s1516_s21 }
 0x8ef   : > { %p1877_p7 = pnand %p1880_p6, %p2201_p9 }
 0x8f1   : > { %2049 = dma.done.wait (!%p1877_p7), %s1517_s27, 128  }
 0x8f2   : > { %2051 = vsyncadd (!%p1877_p7), %s1517_s27, 4294967168  ;;  %s22_s16 = sadd.s32 1, %s2545_s12   ;;  %s2548_s29 = sld [smem:[#allocation6_spill]] }
 0x8f3   : > { %p19_p8 = scmp.ge.s32.totalorder %s22_s16, 6   ;;  %s2549_s11 = sld [smem:[#allocation14_spill]] }
 0x8f4   : > { %s2550_s12 = sld [smem:[#allocation7_spill]]  ;;  %s2551_s13 = sld [smem:[#allocation8_spill]] }
 0x8f5   : > { %s2552_s14 = sld [smem:[#allocation10_spill]]  ;;  %s2553_s15 = sld [smem:[#allocation12_spill]] }
 0x8f6   : > { %s2554_s30 = smov %s2058_s10  ;;  %21 = sbr.rel (!%p19_p8) target bundleno = 11 (0xb), region = 119 }
 0x8f8   : > { %s2555_s10 = smov %s2548_s29 }
 0x8fd   :  { %1522 = vsyncpa [#allocation3], 1 }
 0x8fe   :  { %1524 = vsyncpa [#allocation3 + $0x1], 1 }

</bundles_post_ra>
